<compile_context>
chip_gen: v7x
topology: tpu7x:2x2x1
jax: 0.10.0
libtpu: 0.0.40
codegen_flags: <defaults>
</compile_context>

<pallas_src>
import functools

import jax
import jax.numpy as jnp
from jax.experimental import pallas as pl
from jax.experimental.pallas import tpu as pltpu


# ---------------------------------------------------------------------------
# chip-aware VMEM budget / tile sizing helpers
# ---------------------------------------------------------------------------
def _vmem_limit_bytes():
    cap = 64 * 1024 * 1024                      # conservative fallback (v7x physical)
    try:
        cap = int(pltpu.get_tpu_info().vmem_capacity_bytes)
    except Exception:
        pass
    # half of physical, capped at 64 MiB (v5e/v6e -> 64 MiB, v7x -> 32 MiB)
    return max(16 * 1024 * 1024, min(cap // 2, 64 * 1024 * 1024))


def _sublane_multiple(itemsize):
    # sublane packing factor: f32 -> 8, bf16 -> 16, int8/fp8 -> 32
    return 8 * max(1, 4 // int(itemsize))


def _choose_tiles(rows, lanes, itemsize, per_block_elems):
    """Lane-first (row_tile, lane_tile): widest legal lane tile, then rows."""
    sm = _sublane_multiple(itemsize)
    if lanes * sm <= per_block_elems:
        tm = lanes                                   # full lane dim (always legal)
    else:
        tm = max(128, ((per_block_elems // sm) // 128) * 128)
    max_rows = max(sm, per_block_elems // max(tm, 1))
    if rows <= max_rows:
        br = rows                                    # full row dim (always legal)
    else:
        br = max(sm, (max_rows // sm) * sm)          # multiple of packing factor
    return br, tm


# ---------------------------------------------------------------------------
# Kernel 1: data-dependent init — single pass over x.
# Per (n, c) row of the (N*C, H*W) view, accumulate pivot-shifted sum and
# sum-of-squares into (R,1) f32 outputs (resident across the lane-tile axis).
# ---------------------------------------------------------------------------
def _actnorm_init_kernel(x_ref, pivot_ref, sum_ref, sq_ref, *, hw, tm, need_mask):
    j = pl.program_id(1)
    x = x_ref[...].astype(jnp.float32)               # (br, tm)
    d = x - pivot_ref[...]                           # shifted -> no cancellation
    if need_mask:
        lane = jax.lax.broadcasted_iota(jnp.int32, d.shape, 1)
        d = jnp.where((lane + j * tm) < hw, d, 0.0)
    psum = jnp.sum(d, axis=1, keepdims=True)
    psq = jnp.sum(d * d, axis=1, keepdims=True)

    @pl.when(j == 0)
    def _():
        sum_ref[...] = psum
        sq_ref[...] = psq

    @pl.when(j > 0)
    def _():
        sum_ref[...] += psum
        sq_ref[...] += psq


def actnorm_initialize(x, limit_bytes):
    """x: (N, C, H, W). Returns (loc, scale), each (C, 1) float32."""
    n, c, h, w = x.shape
    hw = h * w
    r = n * c
    x2d = x.reshape(r, hw)                           # zero-copy NCHW view
    # per-channel pivot for shifted sums (tiny strided gather, done once)
    pivot_c = x[0, :, 0, 0].astype(jnp.float32).reshape(c, 1)
    pivot_rows = jnp.tile(pivot_c, (n, 1))           # (R, 1) f32, tiny
    itemsize = jnp.dtype(x.dtype).itemsize
    # only x is big and double-buffered; pivot/outputs are (br,1)
    per_block = max(8 * 128, (3 * limit_bytes // 4) // (2 * itemsize))
    br, tm = _choose_tiles(r, hw, itemsize, per_block)
    grid = (pl.cdiv(r, br), pl.cdiv(hw, tm))
    need_mask = (hw % tm) != 0
    kernel = functools.partial(_actnorm_init_kernel, hw=hw, tm=tm,
                               need_mask=need_mask)
    row_sum, row_sq = pl.pallas_call(
        kernel,
        out_shape=(jax.ShapeDtypeStruct((r, 1), jnp.float32),
                   jax.ShapeDtypeStruct((r, 1), jnp.float32)),
        grid_spec=pltpu.PrefetchScalarGridSpec(
            num_scalar_prefetch=0,
            grid=grid,                               # (row tiles, lane tiles)
            in_specs=[
                pl.BlockSpec((br, tm), lambda i, j: (i, j)),
                pl.BlockSpec((br, 1), lambda i, j: (i, 0)),
            ],
            out_specs=[
                pl.BlockSpec((br, 1), lambda i, j: (i, 0)),
                pl.BlockSpec((br, 1), lambda i, j: (i, 0)),
            ],
        ),
        compiler_params=pltpu.CompilerParams(
            dimension_semantics=("parallel", "arbitrary"),   # v7x: rows split across TCs
            vmem_limit_bytes=limit_bytes),
    )(x2d, pivot_rows)

    # O(N*C) per-channel combine, wrapper-side (matches torch unbiased std)
    m = n * hw
    s = row_sum.reshape(n, c).sum(axis=0)            # (C,)
    q = row_sq.reshape(n, c).sum(axis=0)
    mean = pivot_c[:, 0] + s / m
    var = (q - (s * s) / m) / (m - 1)
    std = jnp.sqrt(jnp.maximum(var, 0.0))
    loc = (-mean).reshape(c, 1)
    scale = (1.0 / (std + 1e-6)).reshape(c, 1)
    return loc, scale


# ---------------------------------------------------------------------------
# Kernel 2: forward affine  h = scale * (x + loc), computed in f32 in-kernel.
# loc/scale blocks are either (br,1) per-row or (1,tm) broadcast patterns.
# ---------------------------------------------------------------------------
def _actnorm_affine_kernel(x_ref, loc_ref, scale_ref, h_ref):
    x = x_ref[...].astype(jnp.float32)
    h_ref[...] = (scale_ref[...] * (x + loc_ref[...])).astype(h_ref.dtype)


def actnorm_affine(x2d, loc_p, scale_p, limit_bytes):
    """x2d: (R, L) zero-copy NCHW view; loc_p/scale_p: (R,1) or (1,L) float32."""
    rows, lanes = x2d.shape
    itemsize = jnp.dtype(x2d.dtype).itemsize
    # double-buffered x in + h out = 4 big blocks; keep ~25% headroom
    per_block = max(8 * 128, (3 * limit_bytes // 4) // (4 * itemsize))
    br, tm = _choose_tiles(rows, lanes, itemsize, per_block)
    grid = (pl.cdiv(rows, br), pl.cdiv(lanes, tm))
    if loc_p.shape[0] == 1:
        p_spec = pl.BlockSpec((1, tm), lambda i, j: (0, j))      # broadcast pattern
    else:
        p_spec = pl.BlockSpec((br, 1), lambda i, j: (i, 0))      # per-row params
    flops = 2 * rows * lanes
    bytes_accessed = 2 * rows * lanes * itemsize + 2 * 4 * (loc_p.size + scale_p.size)
    return pl.pallas_call(
        _actnorm_affine_kernel,
        out_shape=jax.ShapeDtypeStruct((rows, lanes), x2d.dtype),
        grid_spec=pltpu.PrefetchScalarGridSpec(
            num_scalar_prefetch=0,
            grid=grid,
            in_specs=[pl.BlockSpec((br, tm), lambda i, j: (i, j)), p_spec, p_spec],
            out_specs=pl.BlockSpec((br, tm), lambda i, j: (i, j)),
        ),
        compiler_params=pltpu.CompilerParams(
            dimension_semantics=("parallel", "parallel"),
            vmem_limit_bytes=limit_bytes),
        cost_estimate=pl.CostEstimate(flops=int(flops), transcendentals=0,
                                      bytes_accessed=int(bytes_accessed)),
    )(x2d, loc_p, scale_p)


# ---------------------------------------------------------------------------
# ActNorm module equivalent.
# ---------------------------------------------------------------------------
class ActNormPallas:
    def __init__(self, num_features, affine=True, logdet=False):
        assert affine
        self.logdet = logdet
        self.num_features = num_features
        # deterministic init (same as nn.Parameter zeros/ones), stored (C,1) f32
        self.loc = jnp.zeros((num_features, 1), jnp.float32)    # == (1,C,1,1)
        self.scale = jnp.ones((num_features, 1), jnp.float32)   # == (1,C,1,1)
        # TODO(synk): Python-side "initialized" buffer; under jit/vmap this
        # bakes the init-vs-affine branch into the trace (same caveat as the
        # PyTorch buffer).
        self.initialized = 0
        self._vmem_limit = _vmem_limit_bytes()

    def _affine(self, x, loc, scale):
        n, c, h, w = x.shape
        hw = h * w
        if hw >= 128:
            x2d = x.reshape(n * c, hw)                           # zero-copy view
            loc_p = jnp.tile(loc, (n, 1))                        # (N*C,1) f32, tiny
            scale_p = jnp.tile(scale, (n, 1))
        else:
            # fold channel+spatial into lanes so output stores stay lane-dense
            x2d = x.reshape(n, c * hw)                           # zero-copy view
            loc_p = jnp.repeat(loc, hw, axis=1).reshape(1, c * hw)
            scale_p = jnp.repeat(scale, hw, axis=1).reshape(1, c * hw)
        h2d = actnorm_affine(x2d, loc_p, scale_p, self._vmem_limit)
        return h2d.reshape(n, c, h, w)                           # zero-copy back

    def __call__(self, x, reverse=False):
        if reverse:
            return self.reverse(x)
        n, c, height, width = x.shape

        if self.initialized == 0:
            self.loc, self.scale = actnorm_initialize(x, self._vmem_limit)
            self.initialized = 1

        h = self._affine(x, self.loc, self.scale)

        if self.logdet:
            # O(C) scalar work stays wrapper-side (keeps affine grid fully parallel)
            log_abs = jnp.sum(jnp.log(jnp.abs(self.scale)))
            logdet = (height * width * log_abs).astype(x.dtype) * jnp.ones((n,), x.dtype)
            return h, logdet
        return h

    def reverse(self, output):
        # output/scale - loc == (1/scale) * (output + (-loc*scale)); params kept f32
        inv_scale = 1.0 / self.scale
        shifted_loc = -self.loc * self.scale
        return self._affine(output, shifted_loc, inv_scale)


if __name__ == "__main__":
    key = jax.random.PRNGKey(0)
    N, C, H, W = 2, 4, 16, 16
    x = jax.random.normal(key, (N, C, H, W), dtype=jnp.float32) * 2.0 + 0.5

    model = ActNormPallas(num_features=C, logdet=True)
    h, logdet = model(x)
    h = jax.block_until_ready(h)
    logdet = jax.block_until_ready(logdet)

    # --- reference (plain JAX, mirrors the PyTorch semantics) ---
    def ref_params(xx):
        cc = xx.shape[1]
        flat = jnp.transpose(xx, (1, 0, 2, 3)).reshape(cc, -1)
        mean = flat.mean(axis=1, keepdims=True)
        std = jnp.sqrt(jnp.sum((flat - mean) ** 2, axis=1, keepdims=True)
                       / (flat.shape[1] - 1))
        return -mean, 1.0 / (std + 1e-6)

    loc_ref, scale_ref = ref_params(x)
    h_ref = scale_ref[None, :, :, None] * (x + loc_ref[None, :, :, None])
    logdet_ref = H * W * jnp.sum(jnp.log(jnp.abs(scale_ref))) * jnp.ones((N,), x.dtype)

    assert jnp.allclose(h, h_ref, atol=1e-4, rtol=1e-4), "forward mismatch"
    assert jnp.allclose(logdet, logdet_ref, atol=1e-4, rtol=1e-4), "logdet mismatch"

    # reverse round-trip sanity (uses the same affine kernel)
    x_rec = jax.block_until_ready(model(h, reverse=True))
    assert jnp.allclose(x_rec, x, atol=1e-3, rtol=1e-3), "reverse mismatch"

    # small-spatial path (H*W < 128): channel+spatial folded into lanes
    xs = jax.random.normal(jax.random.PRNGKey(0), (2, 4, 4, 4), jnp.float32) * 1.5 - 0.3
    model_s = ActNormPallas(num_features=4, logdet=False)
    hs = jax.block_until_ready(model_s(xs))
    loc_s, scale_s = ref_params(xs)
    hs_ref = scale_s[None, :, :, None] * (xs + loc_s[None, :, :, None])
    assert jnp.allclose(hs, hs_ref, atol=1e-4, rtol=1e-4), "small-spatial mismatch"

    print("KERNEL_OK")
</pallas_src>

<mosaic_0001>
module attributes {stable_mosaic.version = 11 : i64} {
  func.func @_actnorm_init_kernel(%arg0: i32, %arg1: i32, %arg2: memref<8x256xf32, #tpu.memory_space<vmem>>, %arg3: memref<8x1xf32, #tpu.memory_space<vmem>>, %arg4: memref<8x1xf32, #tpu.memory_space<vmem>>, %arg5: memref<8x1xf32, #tpu.memory_space<vmem>>) attributes {dimension_semantics = [#tpu.dimension_semantics<parallel>, #tpu.dimension_semantics<arbitrary>], iteration_bounds = array<i64: 1, 1>, scalar_prefetch = 0 : i64, scratch_operands = 0 : i64, tpu.core_type = #tpu.core_type<tc>, window_params = [{transform_indices = @transform_0, window_bounds = array<i64: 8, 256>}, {transform_indices = @transform_1, window_bounds = array<i64: 8, 1>}, {transform_indices = @transform_2, window_bounds = array<i64: 8, 1>}, {transform_indices = @transform_3, window_bounds = array<i64: 8, 1>}]} {
    %c0 = arith.constant 0 : index
    %c0_0 = arith.constant 0 : index
    %0 = vector.load %arg2[%c0, %c0_0] : memref<8x256xf32, #tpu.memory_space<vmem>>, vector<8x256xf32>
    %c0_1 = arith.constant 0 : index
    %c0_2 = arith.constant 0 : index
    %1 = vector.load %arg3[%c0_1, %c0_2] : memref<8x1xf32, #tpu.memory_space<vmem>>, vector<8x1xf32>
    %2 = vector.broadcast %1 : vector<8x1xf32> to vector<8x256xf32>
    %3 = arith.subf %0, %2 : vector<8x256xf32>
    %cst = arith.constant dense<0.000000e+00> : vector<8xf32>
    %4 = vector.multi_reduction <add>, %3, %cst [1] : vector<8x256xf32> to vector<8xf32>
    %5 = vector.shape_cast %4 : vector<8xf32> to vector<8x1xf32>
    %6 = arith.mulf %3, %3 : vector<8x256xf32>
    %cst_3 = arith.constant dense<0.000000e+00> : vector<8xf32>
    %7 = vector.multi_reduction <add>, %6, %cst_3 [1] : vector<8x256xf32> to vector<8xf32>
    %8 = vector.shape_cast %7 : vector<8xf32> to vector<8x1xf32>
    %c0_i32 = arith.constant 0 : i32
    %9 = arith.cmpi eq, %arg1, %c0_i32 : i32
    %10 = arith.extui %9 : i1 to i32
    %c0_i32_4 = arith.constant 0 : i32
    %11 = arith.cmpi ne, %10, %c0_i32_4 : i32
    scf.if %11 {
      %c0_7 = arith.constant 0 : index
      %c0_8 = arith.constant 0 : index
      %15 = vector.load %arg4[%c0_7, %c0_8] : memref<8x1xf32, #tpu.memory_space<vmem>>, vector<8x1xf32>
      tpu.vector_store %arg4[%c0_7, %c0_8], %5 {strides = array<i32>} : memref<8x1xf32, #tpu.memory_space<vmem>>, vector<8x1xf32>,
      %c0_9 = arith.constant 0 : index
      %c0_10 = arith.constant 0 : index
      %16 = vector.load %arg5[%c0_9, %c0_10] : memref<8x1xf32, #tpu.memory_space<vmem>>, vector<8x1xf32>
      tpu.vector_store %arg5[%c0_9, %c0_10], %8 {strides = array<i32>} : memref<8x1xf32, #tpu.memory_space<vmem>>, vector<8x1xf32>,
    } else {
    }
    %c0_i32_5 = arith.constant 0 : i32
    %12 = arith.cmpi sgt, %arg1, %c0_i32_5 : i32
    %13 = arith.extui %12 : i1 to i32
    %c0_i32_6 = arith.constant 0 : i32
    %14 = arith.cmpi ne, %13, %c0_i32_6 : i32
    scf.if %14 {
      %c0_7 = arith.constant 0 : index
      %c0_8 = arith.constant 0 : index
      %15 = vector.load %arg4[%c0_7, %c0_8] : memref<8x1xf32, #tpu.memory_space<vmem>>, vector<8x1xf32>
      %16 = arith.addf %15, %5 : vector<8x1xf32>
      %c0_9 = arith.constant 0 : index
      %c0_10 = arith.constant 0 : index
      %17 = vector.load %arg4[%c0_9, %c0_10] : memref<8x1xf32, #tpu.memory_space<vmem>>, vector<8x1xf32>
      tpu.vector_store %arg4[%c0_9, %c0_10], %16 {strides = array<i32>} : memref<8x1xf32, #tpu.memory_space<vmem>>, vector<8x1xf32>,
      %c0_11 = arith.constant 0 : index
      %c0_12 = arith.constant 0 : index
      %18 = vector.load %arg5[%c0_11, %c0_12] : memref<8x1xf32, #tpu.memory_space<vmem>>, vector<8x1xf32>
      %19 = arith.addf %18, %8 : vector<8x1xf32>
      %c0_13 = arith.constant 0 : index
      %c0_14 = arith.constant 0 : index
      %20 = vector.load %arg5[%c0_13, %c0_14] : memref<8x1xf32, #tpu.memory_space<vmem>>, vector<8x1xf32>
      tpu.vector_store %arg5[%c0_13, %c0_14], %19 {strides = array<i32>} : memref<8x1xf32, #tpu.memory_space<vmem>>, vector<8x1xf32>,
    } else {
    }
    return
  }
  func.func @transform_0(%arg0: i32, %arg1: i32) -> (i32, i32) {
    %c0_i32 = arith.constant 0 : i32
    return %arg0, %arg1 : i32, i32
  }
  func.func @transform_1(%arg0: i32, %arg1: i32) -> (i32, i32) {
    %c0_i32 = arith.constant 0 : i32
    %c0_i32_0 = arith.constant 0 : i32
    return %arg0, %c0_i32 : i32, i32
  }
  func.func @transform_2(%arg0: i32, %arg1: i32) -> (i32, i32) {
    %c0_i32 = arith.constant 0 : i32
    %c0_i32_0 = arith.constant 0 : i32
    return %arg0, %c0_i32 : i32, i32
  }
  func.func @transform_3(%arg0: i32, %arg1: i32) -> (i32, i32) {
    %c0_i32 = arith.constant 0 : i32
    %c0_i32_0 = arith.constant 0 : i32
    return %arg0, %c0_i32 : i32, i32
  }
}

</mosaic_0001>

<bundles_post_ra>
// kernel: tpu_custom_call.1
= control target key start
LH: loop header
LB: loop body
LE: loop exit
PB: predicated region body
PF: predicated region fallthrough
CT: control target
= control target key end

     0   :  { %9 = vsyncpa [#allocation3], 0  ;;  %s97_s12 = smov [#allocation2]   ;;  %s140_s0 = inlined_call_operand.hbm [shape: f32[8,256], index: 0, kind: input, shape index: {}]   ;;  %s141_s1 = inlined_call_operand.vmem [shape: f32[8,1], index: 1, kind: input, shape index: {}]   ;;  %s142_s2 = inlined_call_operand.vmem [shape: f32[8,1], index: 2, kind: output, shape index: {0}]   ;;  %s143_s3 = inlined_call_operand.vmem [shape: f32[8,1], index: 3, kind: output, shape index: {1}]  }
   0x1   :  { %s16_s13 = sshll.u32 %s97_s12, 4  ;;  %s73_s16 = scalar_lea.hbm %s140_s0, 256  ;;  %s17_s13 = int_to_ptr.vmem [resolvable:$true] %s16_s13 }
   0x2   :  { %p74_p0 = scmp.ne.s32.totalorder %s140_s0, %s73_s16  ;;  %p77_p1 = scmp.lt.u32.totalorder %s73_s16, %s140_s0 }
   0x4   :  { %p79_p2 = pnand %p77_p1, %p74_p0 }
   0x6   :  { %82 = shalt.err (!%p79_p2)
}
   0x7   :  { %s83_s21 = scalar_lea.vmem %s17_s13, 256  ;;  %p88_p4 = scmp.lt.s32.totalorder %s17_s13, %s17_s13 }
   0x8   :  { %p84_p3 = scmp.ne.s32.totalorder %s17_s13, %s83_s21  ;;  %p89_p5 = scmp.lt.s32.totalorder %s83_s21, %s83_s21 }
   0xa   :  { %p90_p6 = por %p89_p5, %p88_p4 }
   0xc   :  { %p91_p7 = pnand %p90_p6, %p84_p3 }
   0xe   :  { %94 = shalt.err (!%p91_p7)
}
   0xf   :  { %19 = dma.hbm_to_vmem [thread:$0]  %s140_s0, 256, %s17_s13, [#allocation3]  }
  0x10   :  { %95 = dma.done.wait [#allocation3], 256  }
  0x11   :  { %96 = vsyncadd [#allocation3], 4294967040  ;;  %v98_v0 = vmov 0   ;;  %v27_v1 = vld [vmem:[%s141_s1] sm:$0xff]  ;;  %v26_v3 = vld [vmem:[#allocation2 + $0x8] sm:$0xff]  ;;  %vm47_vm0 = vcmask 7168  }
  0x12   :  { %72 = vset.pattern.permute.xlu0 %v98_v0  ;;  %v25_v2 = vld [vmem:[#allocation2] sm:$0xff] }
  0x13   :  { %30 = vperm.xlu0 %72, %v27_v1  }
  0x92   :  { %v31_v4 = vpop.permute.xlu0 %30 }
  0x93   :  { %v33_v5 = vsub.f32 %v25_v2, %v31_v4  ;;  %v34_v6 = vsub.f32 %v26_v3, %v31_v4 }
  0x95   :  { %v35_v7 = vadd.f32 %v34_v6, %v33_v5  ;;  %v38_v8 = vmul.f32 %v33_v5, %v33_v5  ;;  %v39_v9 = vmul.f32 %v34_v6, %v34_v6 }
  0x97   :  { %36 = vadd.xlane.f32.xlu0 %v35_v7  ;;  %v40_v10 = vadd.f32 %v39_v9, %v38_v8 }
  0x99   :  { %41 = vadd.xlane.f32.xlu1 %v40_v10 }
 0x124   :  { %v37_v11 = vpop.xlane.xlu0 %36 }
 0x125   :  { %48 = vst.msk [vmem:[%s142_s2] sm:$0xff] %vm47_vm0, %v37_v11 }
 0x126   :  { %v42_v12 = vpop.xlane.xlu1 %41 }
 0x127   :  { %49 = vst.msk [vmem:[%s143_s3] sm:$0xff] %vm47_vm0, %v42_v12 }
 0x128   :  { %69 = vsyncpa [#allocation3], 1 }

</bundles_post_ra>
